<compile_context>
chip_gen: v7x
topology: tpu7x:2x2x1
jax: 0.10.0
libtpu: 0.0.40
codegen_flags: <defaults>
</compile_context>

<pallas_src>
import functools
import math

import jax
import jax.numpy as jnp
from jax.experimental import pallas as pl
from jax.experimental.pallas import tpu as pltpu


def _scaled_linear_kernel(x_ref, w_ref, b_ref, o_ref, acc_ref, *, scale):
    # x_ref: (tm, tk)   w_ref: (tn, tk)   b_ref: (1, tn)
    # o_ref: (tm, tn)   acc_ref: (tm, tn) f32 scratch (persists across K steps)
    @pl.when(pl.program_id(2) == 0)
    def _():
        acc_ref[...] = jnp.zeros_like(acc_ref)

    # Contract x's last dim against w's last dim: (tm, tk) x (tn, tk) -> (tm, tn).
    acc_ref[...] += jax.lax.dot_general(
        x_ref[...], w_ref[...],
        dimension_numbers=(((1,), (1,)), ((), ())),
        preferred_element_type=jnp.float32)

    @pl.when(pl.program_id(2) == pl.num_programs(2) - 1)
    def _():
        out = acc_ref[...] * scale + b_ref[...]      # fuse scale + bias here
        o_ref[...] = out.astype(o_ref.dtype)


def _pick_tile(dim, pref):
    # Use the preferred tile only if it divides the dim exactly; otherwise take
    # the full dim (valid BlockSpec: full-extent blocks bypass the (8,128) rule).
    return pref if dim % pref == 0 else dim


def scaled_linear(x, weight, bias=None, scale=1.0, *, tm=256, tn=256, tk=512):
    """Forward pass of ScaledLinear.

    x:      (..., in_features)
    weight: (out_features, in_features)   -- PyTorch layout, used as-is
    bias:   (out_features,) or None
    returns (..., out_features)
    """
    *lead, K = x.shape
    N, K_w = weight.shape
    assert K_w == K
    M = math.prod(lead) if lead else 1

    x2 = x.reshape(M, K)
    if bias is None:
        bias = jnp.zeros((N,), x.dtype)
    b2 = bias.reshape(1, N)

    tm = _pick_tile(M, tm)
    tn = _pick_tile(N, tn)
    tk = _pick_tile(K, tk)
    grid = (M // tm, N // tn, K // tk)

    kernel = functools.partial(_scaled_linear_kernel, scale=float(scale))

    out2 = pl.pallas_call(
        kernel,
        out_shape=jax.ShapeDtypeStruct((M, N), x.dtype),
        grid_spec=pltpu.PrefetchScalarGridSpec(
            num_scalar_prefetch=0,
            grid=grid,
            in_specs=[
                pl.BlockSpec((tm, tk), lambda i, j, k: (i, k)),   # activations
                pl.BlockSpec((tn, tk), lambda i, j, k: (j, k)),   # weight (N, K)
                pl.BlockSpec((1, tn), lambda i, j, k: (0, j)),    # bias
            ],
            out_specs=pl.BlockSpec((tm, tn), lambda i, j, k: (i, j)),
            scratch_shapes=[pltpu.VMEM((tm, tn), jnp.float32)],
        ),
        compiler_params=pltpu.CompilerParams(
            dimension_semantics=("parallel", "parallel", "arbitrary"),
            vmem_limit_bytes=64 << 20,
        ),
    )(x2, weight, b2)

    return out2.reshape(*lead, N)


if __name__ == "__main__":
    key = jax.random.PRNGKey(0)
    k_x, k_w, k_b = jax.random.split(key, 3)

    # Module config: ScaledLinear(in_features=32, out_features=128, bias=True, scale=0.5)
    B, S, IN, OUT = 2, 8, 32, 128
    scale = 0.5

    x = jax.random.normal(k_x, (B, S, IN), jnp.float32)
    # weight = torch.rand(out, in) * 2 - 1  ->  uniform(-1, 1)
    weight = jax.random.uniform(k_w, (OUT, IN), jnp.float32, -1.0, 1.0)
    # bias = nn.Linear(in, out).bias  ->  uniform(-1/sqrt(in), 1/sqrt(in))
    bound = 1.0 / (IN ** 0.5)
    bias = jax.random.uniform(k_b, (OUT,), jnp.float32, -bound, bound)

    out = scaled_linear(x, weight, bias, scale)
    out = jax.block_until_ready(out)
    assert out.shape == (B, S, OUT), out.shape

    # Reference: F.linear(x, weight * scale, bias)
    ref = jnp.einsum("bsk,nk->bsn", x, weight * scale) + bias[None, None, :]
    err = float(jnp.max(jnp.abs(out - ref)))
    assert jnp.allclose(out, ref, atol=1e-5, rtol=1e-5), err

    print("KERNEL_OK")
</pallas_src>

<mosaic_0001>
module attributes {stable_mosaic.version = 11 : i64} {
  func.func @_scaled_linear_kernel(%arg0: i32, %arg1: i32, %arg2: i32, %arg3: memref<16x32xf32, #tpu.memory_space<vmem>>, %arg4: memref<128x32xf32, #tpu.memory_space<vmem>>, %arg5: memref<1x128xf32, #tpu.memory_space<vmem>>, %arg6: memref<16x128xf32, #tpu.memory_space<vmem>>, %arg7: memref<16x128xf32, #tpu.memory_space<vmem>>) attributes {dimension_semantics = [#tpu.dimension_semantics<parallel>, #tpu.dimension_semantics<parallel>, #tpu.dimension_semantics<arbitrary>], iteration_bounds = array<i64: 1, 1, 1>, scalar_prefetch = 0 : i64, scratch_operands = 1 : i64, tpu.core_type = #tpu.core_type<tc>, window_params = [{transform_indices = @transform_0, window_bounds = array<i64: 16, 32>}, {transform_indices = @transform_1, window_bounds = array<i64: 128, 32>}, {transform_indices = @transform_2, window_bounds = array<i64: 1, 128>}, {transform_indices = @transform_3, window_bounds = array<i64: 16, 128>}]} {
    %c0_i32 = arith.constant 0 : i32
    %0 = arith.cmpi eq, %arg2, %c0_i32 : i32
    %1 = arith.extui %0 : i1 to i32
    %c0_i32_0 = arith.constant 0 : i32
    %2 = arith.cmpi ne, %1, %c0_i32_0 : i32
    scf.if %2 {
      %cst_10 = arith.constant 0.000000e+00 : f32
      %12 = vector.broadcast %cst_10 : f32 to vector<16x128xf32>
      %c0_11 = arith.constant 0 : index
      %c0_12 = arith.constant 0 : index
      %13 = vector.load %arg7[%c0_11, %c0_12] : memref<16x128xf32, #tpu.memory_space<vmem>>, vector<16x128xf32>
      tpu.vector_store %arg7[%c0_11, %c0_12], %12 {strides = array<i32>} : memref<16x128xf32, #tpu.memory_space<vmem>>, vector<16x128xf32>,
    } else {
    }
    %c0 = arith.constant 0 : index
    %c0_1 = arith.constant 0 : index
    %3 = vector.load %arg7[%c0, %c0_1] : memref<16x128xf32, #tpu.memory_space<vmem>>, vector<16x128xf32>
    %c0_2 = arith.constant 0 : index
    %c0_3 = arith.constant 0 : index
    %4 = vector.load %arg3[%c0_2, %c0_3] : memref<16x32xf32, #tpu.memory_space<vmem>>, vector<16x32xf32>
    %c0_4 = arith.constant 0 : index
    %c0_5 = arith.constant 0 : index
    %5 = vector.load %arg4[%c0_4, %c0_5] : memref<128x32xf32, #tpu.memory_space<vmem>>, vector<128x32xf32>
    %cst = arith.constant dense<0.000000e+00> : vector<16x128xf32>
    %6 = tpu.matmul %4, %5, %cst {dimension_numbers = #tpu.dot_dimension_numbers<[1], [1], [0], [0], [0, 0, 1, 0], [], []>} : vector<16x32xf32>, vector<128x32xf32>, vector<16x128xf32> -> vector<16x128xf32>
    %7 = arith.addf %3, %6 : vector<16x128xf32>
    %c0_6 = arith.constant 0 : index
    %c0_7 = arith.constant 0 : index
    %8 = vector.load %arg7[%c0_6, %c0_7] : memref<16x128xf32, #tpu.memory_space<vmem>>, vector<16x128xf32>
    tpu.vector_store %arg7[%c0_6, %c0_7], %7 {strides = array<i32>} : memref<16x128xf32, #tpu.memory_space<vmem>>, vector<16x128xf32>,
    %c0_i32_8 = arith.constant 0 : i32
    %9 = arith.cmpi eq, %arg2, %c0_i32_8 : i32
    %10 = arith.extui %9 : i1 to i32
    %c0_i32_9 = arith.constant 0 : i32
    %11 = arith.cmpi ne, %10, %c0_i32_9 : i32
    scf.if %11 {
      %c0_10 = arith.constant 0 : index
      %c0_11 = arith.constant 0 : index
      %12 = vector.load %arg7[%c0_10, %c0_11] : memref<16x128xf32, #tpu.memory_space<vmem>>, vector<16x128xf32>
      %cst_12 = arith.constant 5.000000e-01 : f32
      %13 = vector.broadcast %cst_12 : f32 to vector<16x128xf32>
      %14 = arith.mulf %12, %13 : vector<16x128xf32>
      %c0_13 = arith.constant 0 : index
      %c0_14 = arith.constant 0 : index
      %15 = vector.load %arg5[%c0_13, %c0_14] : memref<1x128xf32, #tpu.memory_space<vmem>>, vector<1x128xf32>
      %16 = vector.broadcast %15 : vector<1x128xf32> to vector<16x128xf32>
      %17 = arith.addf %14, %16 : vector<16x128xf32>
      %c0_15 = arith.constant 0 : index
      %c0_16 = arith.constant 0 : index
      %18 = vector.load %arg6[%c0_15, %c0_16] : memref<16x128xf32, #tpu.memory_space<vmem>>, vector<16x128xf32>
      tpu.vector_store %arg6[%c0_15, %c0_16], %17 {strides = array<i32>} : memref<16x128xf32, #tpu.memory_space<vmem>>, vector<16x128xf32>,
    } else {
    }
    return
  }
  func.func @transform_0(%arg0: i32, %arg1: i32, %arg2: i32) -> (i32, i32) {
    %c0_i32 = arith.constant 0 : i32
    return %arg0, %arg2 : i32, i32
  }
  func.func @transform_1(%arg0: i32, %arg1: i32, %arg2: i32) -> (i32, i32) {
    %c0_i32 = arith.constant 0 : i32
    return %arg1, %arg2 : i32, i32
  }
  func.func @transform_2(%arg0: i32, %arg1: i32, %arg2: i32) -> (i32, i32) {
    %c0_i32 = arith.constant 0 : i32
    %c0_i32_0 = arith.constant 0 : i32
    return %c0_i32, %arg1 : i32, i32
  }
  func.func @transform_3(%arg0: i32, %arg1: i32, %arg2: i32) -> (i32, i32) {
    %c0_i32 = arith.constant 0 : i32
    return %arg0, %arg1 : i32, i32
  }
}

</mosaic_0001>

<bundles_post_ra>
// kernel: tpu_custom_call.1
= control target key start
LH: loop header
LB: loop body
LE: loop exit
PB: predicated region body
PF: predicated region fallthrough
CT: control target
= control target key end

     0   :  { %8 = vsyncpa [#allocation4], 0  ;;  %s600_s0 = inlined_call_operand.hbm [shape: f32[16,32], index: 0, kind: input, shape index: {}]   ;;  %s601_s1 = inlined_call_operand.hbm [shape: f32[128,32], index: 1, kind: input, shape index: {}]   ;;  %s602_s2 = inlined_call_operand.hbm [shape: f32[1,128], index: 2, kind: input, shape index: {}]   ;;  %s603_s3 = inlined_call_operand.hbm [shape: f32[16,128], index: 3, kind: output, shape index: {}]  }
   0x1   :  { %9 = vsyncpa [#allocation7], 0 }
   0x2   :  { %10 = vsyncpa [#allocation5], 0  ;;  %s470_s12 = smov [#allocation6]   ;;  %s471_s14 = smov [#allocation3]  }
   0x3   :  { %s28_s13 = sshll.u32 %s470_s12, 4  ;;  %s16_s15 = sshll.u32 %s471_s14, 4  ;;  %s29_s13 = int_to_ptr.vmem [resolvable:$true] %s28_s13  ;;  %s496_s15 = int_to_ptr.vmem [resolvable:$true] %s16_s15 }
   0x4   :  { %s376_s18 = scalar_lea.hbm %s601_s1, 2048 }
   0x5   :  { %p377_p0 = scmp.ne.s32.totalorder %s601_s1, %s376_s18  ;;  %p380_p1 = scmp.lt.u32.totalorder %s376_s18, %s601_s1 }
   0x7   :  { %p382_p2 = pnand %p380_p1, %p377_p0 }
   0x9   :  { %385 = shalt.err (!%p382_p2)
}
   0xa   :  { %s386_s23 = scalar_lea.vmem %s29_s13, 2048  ;;  %p391_p4 = scmp.lt.s32.totalorder %s29_s13, %s29_s13 }
   0xb   :  { %p387_p3 = scmp.ne.s32.totalorder %s29_s13, %s386_s23  ;;  %p392_p5 = scmp.lt.s32.totalorder %s386_s23, %s386_s23 }
   0xd   :  { %p393_p6 = por %p392_p5, %p391_p4 }
   0xf   :  { %p394_p7 = pnand %p393_p6, %p387_p3 }
  0x11   :  { %397 = shalt.err (!%p394_p7)
}
  0x12   :  { %s472_s24 = smov 128   ;;  %s473_s25 = smov 8  }
  0x13   :  { %34 = dma.hbm_to_vmem [thread:$0]  %s601_s1, 2048, %s29_s13, [#allocation7], %s472_s24, %s472_s24, %s473_s25  }
  0x14   :  { %s398_s30 = scalar_lea.hbm %s600_s0, 256 }
  0x15   :  { %p399_p8 = scmp.ne.s32.totalorder %s600_s0, %s398_s30  ;;  %p402_p9 = scmp.lt.u32.totalorder %s398_s30, %s600_s0 }
  0x17   :  { %p404_p10 = pnand %p402_p9, %p399_p8 }
  0x19   :  { %407 = shalt.err (!%p404_p10)
}
  0x1a   :  { %s408_s8 = scalar_lea.vmem %s496_s15, 256  ;;  %p413_p12 = scmp.lt.s32.totalorder %s496_s15, %s496_s15 }
  0x1b   :  { %p409_p11 = scmp.ne.s32.totalorder %s496_s15, %s408_s8  ;;  %p414_p13 = scmp.lt.s32.totalorder %s408_s8, %s408_s8 }
  0x1d   :  { %p415_p0 = por %p414_p13, %p413_p12 }
  0x1f   :  { %p416_p1 = pnand %p415_p0, %p409_p11 }
  0x21   :  { %419 = shalt.err (!%p416_p1)
}
  0x22   :  { %22 = dma.hbm_to_vmem [thread:$0]  %s600_s0, 256, %s496_s15, [#allocation4], %s472_s24, %s472_s24, %s473_s25  }
  0x23   :  { %s474_s10 = smov [#allocation8]   ;;  %s420_s14 = scalar_lea.hbm %s602_s2, 16 }
  0x24   :  { %s41_s11 = sshll.u32 %s474_s10, 4  ;;  %p421_p2 = scmp.ne.s32.totalorder %s602_s2, %s420_s14  ;;  %s42_s11 = int_to_ptr.vmem [resolvable:$true] %s41_s11 }
  0x25   :  { %p424_p3 = scmp.lt.u32.totalorder %s420_s14, %s602_s2 }
  0x27   :  { %p426_p4 = pnand %p424_p3, %p421_p2 }
  0x29   :  { %429 = shalt.err (!%p426_p4)
}
  0x2a   :  { %s430_s20 = scalar_lea.vmem %s42_s11, 16  ;;  %s434_s0 = scalar_lea.vmem %s42_s11, 32 }
  0x2b   :  { %p431_p5 = scmp.ne.s32.totalorder %s42_s11, %s430_s20  ;;  %p435_p6 = scmp.lt.s32.totalorder %s42_s11, %s42_s11 }
  0x2c   :  { %p436_p7 = scmp.lt.s32.totalorder %s434_s0, %s430_s20 }
  0x2e   :  { %p437_p8 = por %p436_p7, %p435_p6 }
  0x30   :  { %p438_p9 = pnand %p437_p8, %p431_p5 }
  0x32   :  { %441 = shalt.err (!%p438_p9)
}
  0x33   :  { %44 = dma.hbm_to_vmem [thread:$0]  %s602_s2, 16, %s42_s11, [#allocation7]  }
  0x34   :  { %464 = dma.done.wait [#allocation4], 256  }
  0x35   :  { %465 = vsyncadd [#allocation4], 4294967040 }
  0x36   :  { %466 = dma.done.wait [#allocation7], 2064  }
  0x37   :  { %467 = vsyncadd [#allocation7], 4294965232  ;;  %vm80_vm0 = vcmask 261120   ;;  %v64_v1 = vld [vmem:[#allocation6] sm:$0xff]  ;;  %v65_v2 = vld [vmem:[#allocation6 + $0x8] sm:$0xff]  ;;  %s475_s2 = smov [#allocation9]  }
  0x38   :  { %vm547_vm1 = vmpackc.low %vm80_vm0, %vm80_vm0  ;;  %v66_v3 = vld [vmem:[#allocation6 + $0x10] sm:$0xff]  ;;  %v322_v4 = vpack.c.bf16 %v65_v2, %v64_v1  ;;  %v67_v5 = vld [vmem:[#allocation6 + $0x18] sm:$0xff]  ;;  %s237_s22 = sshll.u32 %s475_s2, 4  ;;  %s238_s22 = int_to_ptr.vmem [resolvable:$true] %s237_s22 }
  0x39   :  { %v328_v6 = vpack.c.bf16 %v67_v5, %v66_v3  ;;  %v62_v7 = vld [vmem:[#allocation3] sm:$0xff]  ;;  %v68_v8 = vld [vmem:[#allocation6 + $0x20] sm:$0xff]  ;;  %v69_v9 = vld [vmem:[#allocation6 + $0x28] sm:$0xff]  ;;  %s442_s23 = scalar_lea.vmem %s238_s22, 256  ;;  %p447_p11 = scmp.lt.s32.totalorder %s238_s22, %s238_s22 }
  0x3a   :  { %324 = vmatprep.subr.msk.bf16.mxu0 %vm547_vm1, %v322_v4  ;;  %319 = vmatprep.mubr.msk.f32.mxu0 %vm80_vm0, %v62_v7  ;;  %v334_v10 = vpack.c.bf16 %v69_v9, %v68_v8  ;;  %v70_v11 = vld [vmem:[#allocation6 + $0x30] sm:$0xff]  ;;  %v71_v12 = vld [vmem:[#allocation6 + $0x38] sm:$0xff]  ;;  %v72_v14 = vld [vmem:[#allocation6 + $0x40] sm:$0xff]  ;;  %p443_p10 = scmp.ne.s32.totalorder %s238_s22, %s442_s23  ;;  %p448_p12 = scmp.lt.s32.totalorder %s442_s23, %s442_s23 }
  0x3b   :  { %327 = vmatpush3.bf16.xpose.msk.msra.mxu0 %vm547_vm1, %v322_v4  ;;  %v340_v13 = vpack.c.bf16 %v71_v12, %v70_v11  ;;  %v73_v15 = vld [vmem:[#allocation6 + $0x48] sm:$0xff]  ;;  %v74_v17 = vld [vmem:[#allocation6 + $0x50] sm:$0xff]  ;;  %v75_v18 = vld [vmem:[#allocation6 + $0x58] sm:$0xff] }
  0x3c   :  { %330 = vmatprep.subr.msk.bf16.mxu0 %vm547_vm1, %v328_v6  ;;  %v346_v16 = vpack.c.bf16 %v73_v15, %v72_v14  ;;  %v352_v19 = vpack.c.bf16 %v75_v18, %v74_v17  ;;  %v76_v20 = vld [vmem:[#allocation6 + $0x60] sm:$0xff]  ;;  %v77_v21 = vld [vmem:[#allocation6 + $0x68] sm:$0xff]  ;;  %v78_v23 = vld [vmem:[#allocation6 + $0x70] sm:$0xff]  ;;  %p449_p13 = por %p448_p12, %p447_p11 }
  0x3d   :  { %v358_v22 = vpack.c.bf16 %v77_v21, %v76_v20  ;;  %v79_v24 = vld [vmem:[#allocation6 + $0x78] sm:$0xff]  ;;  %v268_v28 = vld [vmem:[#allocation8] ss:$0 sm:$0xff] }
  0x3e   :  { %v364_v25 = vpack.c.bf16 %v79_v24, %v78_v23  ;;  %v63_v26 = vld [vmem:[#allocation3 + $0x8] sm:$0xff]  ;;  %p450_p0 = pnand %p449_p13, %p443_p10 }
  0x43   :  { %333 = vmatpush3.bf16.xpose.msk.msra.mxu0 %vm547_vm1, %v328_v6 }
  0x44   :  { %336 = vmatprep.subr.msk.bf16.mxu0 %vm547_vm1, %v334_v10 }
  0x4b   :  { %339 = vmatpush3.bf16.xpose.msk.msra.mxu0 %vm547_vm1, %v334_v10 }
  0x4c   :  { %342 = vmatprep.subr.msk.bf16.mxu0 %vm547_vm1, %v340_v13 }
  0x53   :  { %345 = vmatpush3.bf16.xpose.msk.msra.mxu0 %vm547_vm1, %v340_v13 }
  0x54   :  { %348 = vmatprep.subr.msk.bf16.mxu0 %vm547_vm1, %v346_v16 }
  0x5b   :  { %351 = vmatpush3.bf16.xpose.msk.msra.mxu0 %vm547_vm1, %v346_v16 }
  0x5c   :  { %354 = vmatprep.subr.msk.bf16.mxu0 %vm547_vm1, %v352_v19 }
  0x63   :  { %357 = vmatpush3.bf16.xpose.msk.msra.mxu0 %vm547_vm1, %v352_v19 }
  0x64   :  { %360 = vmatprep.subr.msk.bf16.mxu0 %vm547_vm1, %v358_v22 }
  0x6b   :  { %363 = vmatpush3.bf16.xpose.msk.msra.mxu0 %vm547_vm1, %v358_v22 }
  0x6c   :  { %366 = vmatprep.subr.msk.bf16.mxu0 %vm547_vm1, %v364_v25 }
  0x73   :  { %369 = vmatpush3.bf16.xpose.msk.msra.mxu0 %vm547_vm1, %v364_v25 }
  0x7a   :  { %320 = vmatmul.mubr.msk.f32.vlgmr.msra.gmra.mrb[0].mxu0 %vm80_vm0, %v63_v26 }
 0x14d   :  { %v321_v27 = vpop.f32.mrb[0].mxu0 }
 0x14e   :  { %v220_v29 = vmul.f32 0.5, %v321_v27  ;;  %v201_v30 = vpop.f32.mrb[1].mxu0 }
 0x14f   :  { %v219_v31 = vmul.f32 0.5, %v201_v30 }
 0x150   :  { %v229_v32 = vadd.f32 %v268_v28, %v220_v29 }
 0x151   :  { %v228_v33 = vadd.f32 %v268_v28, %v219_v31 }
 0x152   :  { %231 = vst [vmem:[#allocation9 + $0x8] sm:$0xff] %v229_v32 }
 0x153   :  { %230 = vst [vmem:[#allocation9] sm:$0xff] %v228_v33 }
 0x154   :  { %453 = shalt.err (!%p450_p0)
}
 0x155   :  { %s454_s28 = scalar_lea.hbm %s603_s3, 256 }
 0x156   :  { %p455_p1 = scmp.ne.s32.totalorder %s603_s3, %s454_s28  ;;  %p458_p2 = scmp.lt.u32.totalorder %s454_s28, %s603_s3 }
 0x158   :  { %p460_p3 = pnand %p458_p2, %p455_p1 }
 0x15a   :  { %463 = shalt.err (!%p460_p3)
}
 0x15b   :  { %243 = dma.vmem_to_hbm [thread:$0]  %s238_s22, 256, %s603_s3, [#allocation5], %s472_s24, %s472_s24, %s473_s25  }
 0x15c   :  { %468 = dma.done.wait [#allocation5], 256  }
 0x15d   :  { %469 = vsyncadd [#allocation5], 4294967040 }
 0x15e   :  { %247 = vsyncpa [#allocation4], 1 }
 0x15f   :  { %248 = vsyncpa [#allocation7], 1 }
 0x160   :  { %249 = vsyncpa [#allocation5], 1 }

</bundles_post_ra>
